<compile_context>
chip_gen: v5e
topology: v5e:2x2
jax: 0.10.0
libtpu: 0.0.40
codegen_flags: <defaults>
</compile_context>

<pallas_src>
import functools

import jax
import jax.numpy as jnp
from jax.experimental import pallas as pl
from jax.experimental.pallas import tpu as pltpu


_LANES = 128
_SUBLANES = 8
_TARGET_BLOCK_BYTES = 4 * 1024 * 1024   # per-input block (x2 inputs, x2 buffers)
_VMEM_LIMIT_BYTES = 48 * 1024 * 1024    # headroom inside v7x's 64 MiB physical VMEM


def _largest_divisor_leq(n, cap):
    cap = int(max(1, min(n, cap)))
    for d in range(cap, 0, -1):
        if n % d == 0:
            return d
    return 1


def _choose_tiles(B, C, HW, itemsize):
    """Pick (TB, TC) honoring the (8, 128) block-tiling rules.

    HW (lane axis) is always kept whole; TC is either the full channel count
    or a multiple of 8 dividing C; TB is any divisor of B.
    """
    row_bytes = C * HW * itemsize  # one batch row, all channels
    if row_bytes <= _TARGET_BLOCK_BYTES:
        tb = _largest_divisor_leq(B, _TARGET_BLOCK_BYTES // row_bytes)
        tc = C
    else:
        tb = 1
        if C % 8 == 0:
            cap = max(8, (_TARGET_BLOCK_BYTES // (HW * itemsize)) // 8 * 8)
            tc = 8
            for cand in range(min(C, cap), 7, -8):
                if C % cand == 0:
                    tc = cand
                    break
        else:
            # Cannot tile the channel axis cleanly under the (8,128) rule;
            # fall back to whole-channel blocks (may need a larger VMEM limit
            # for very large activations).
            tc = C
    # Prefer >=2 batch tiles so the "parallel" axis can be megacore-sharded.
    if tb == B and B > 1:
        tb = _largest_divisor_leq(B, B // 2)
    return tb, tc


def _at_pair_kernel(s_ref, t_ref, o_ref, ssq_s, ssq_t, *, p, c_total):
    """Accumulate channel sums of x**p over the C grid axis; at the last
    channel step normalize and emit the per-batch-tile SSE partial."""
    c = pl.program_id(1)

    @pl.when(c == 0)
    def _init():
        ssq_s[...] = jnp.zeros_like(ssq_s)
        ssq_t[...] = jnp.zeros_like(ssq_t)

    # Per-tile f32 upcast only (never the full array).
    s = s_ref[...].astype(jnp.float32)
    t = t_ref[...].astype(jnp.float32)
    if p == 2:
        ssq_s[...] += jnp.sum(s * s, axis=1)
        ssq_t[...] += jnp.sum(t * t, axis=1)
    else:
        ssq_s[...] += jnp.sum(s ** p, axis=1)
        ssq_t[...] += jnp.sum(t ** p, axis=1)

    @pl.when(c == pl.num_programs(1) - 1)
    def _finalize():
        inv_c = jnp.float32(1.0 / c_total)
        eps = jnp.float32(1e-12)
        # Channel mean of x**p (the 1/C factor is kept so the eps clamp
        # matches F.normalize exactly).
        a_s = ssq_s[...] * inv_c
        a_t = ssq_t[...] * inv_c
        # F.normalize(..., dim=1): x / max(||x||_2, eps)
        ns = jnp.sqrt(jnp.sum(a_s * a_s, axis=-1, keepdims=True))
        nt = jnp.sqrt(jnp.sum(a_t * a_t, axis=-1, keepdims=True))
        a_s = a_s / jnp.maximum(ns, eps)
        a_t = a_t / jnp.maximum(nt, eps)
        diff = a_s - a_t
        sse = jnp.sum(diff * diff)  # partial sum over (TB, HW)
        # Lane-dense unmasked store (fast path) of the replicated scalar.
        o_ref[...] = jnp.full(o_ref.shape, sse, dtype=jnp.float32)


def _at_pair_loss(s, t, p=2):
    """s, t: (B, C, H, W) -> scalar MSE of L2-normalized attention maps."""
    B, C, H, W = s.shape
    HW = H * W
    s3 = s.reshape(B, C, HW)
    t3 = t.reshape(B, C, HW)

    itemsize = max(jnp.dtype(s.dtype).itemsize, jnp.dtype(t.dtype).itemsize)
    tb, tc = _choose_tiles(B, C, HW, itemsize)
    nb, nc = B // tb, C // tc

    bytes_accessed = (
        B * C * HW * (jnp.dtype(s.dtype).itemsize + jnp.dtype(t.dtype).itemsize)
        + nb * _SUBLANES * _LANES * 4
    )
    cost = pl.CostEstimate(
        flops=4 * B * C * HW + 6 * B * HW,
        transcendentals=2 * B,
        bytes_accessed=bytes_accessed,
    )

    out = pl.pallas_call(
        functools.partial(_at_pair_kernel, p=p, c_total=C),
        out_shape=jax.ShapeDtypeStruct((nb, _SUBLANES, _LANES), jnp.float32),
        grid_spec=pltpu.PrefetchScalarGridSpec(
            num_scalar_prefetch=0,
            grid=(nb, nc),
            in_specs=[
                pl.BlockSpec((tb, tc, HW), lambda b, c: (b, c, 0)),
                pl.BlockSpec((tb, tc, HW), lambda b, c: (b, c, 0)),
            ],
            out_specs=pl.BlockSpec((1, _SUBLANES, _LANES), lambda b, c: (b, 0, 0)),
            scratch_shapes=[
                pltpu.VMEM((tb, HW), jnp.float32),
                pltpu.VMEM((tb, HW), jnp.float32),
            ],
        ),
        compiler_params=pltpu.CompilerParams(
            dimension_semantics=("parallel", "arbitrary"),
            vmem_limit_bytes=_VMEM_LIMIT_BYTES,
        ),
        cost_estimate=cost,
    )(s3, t3)

    # Per-batch-tile partial SSEs -> global mean over all B*HW elements.
    return jnp.sum(out[:, 0, 0]) / jnp.float32(B * HW)


def at_loss(act_s_list, act_t_list, p=2, beta=1000.0):
    """AT.forward: sum of per-pair MSEs on normalized attention maps * beta."""
    losses = [
        _at_pair_loss(s, jax.lax.stop_gradient(t), p=p)
        for s, t in zip(act_s_list, act_t_list)
    ]
    return jnp.sum(jnp.stack(losses, axis=0), axis=0) * jnp.float32(beta)


if __name__ == "__main__":
    key = jax.random.PRNGKey(0)
    k1, k2, k3, k4 = jax.random.split(key, 4)

    # Two (student, teacher) activation pairs, NCHW like the PyTorch module.
    s1 = jax.random.normal(k1, (2, 4, 16, 16), dtype=jnp.float32)
    t1 = jax.random.normal(k2, (2, 4, 16, 16), dtype=jnp.float32)
    s2 = jax.random.normal(k3, (2, 8, 8, 8), dtype=jnp.float32)
    t2 = jax.random.normal(k4, (2, 8, 8, 8), dtype=jnp.float32)

    loss = at_loss([s1, s2], [t1, t2], p=2, beta=1000.0)
    jax.block_until_ready(loss)

    # Pure-JAX reference check (same math, no Pallas).
    def ref_attn(x):
        B, C, H, W = x.shape
        a = jnp.mean(x ** 2, axis=1).reshape(B, H * W)
        n = jnp.sqrt(jnp.sum(a * a, axis=-1, keepdims=True))
        return a / jnp.maximum(n, 1e-12)

    ref = (
        jnp.mean((ref_attn(s1) - ref_attn(t1)) ** 2)
        + jnp.mean((ref_attn(s2) - ref_attn(t2)) ** 2)
    ) * 1000.0
    assert jnp.allclose(loss, ref, rtol=1e-5, atol=1e-6), (loss, ref)

    print("KERNEL_OK")
</pallas_src>

<mosaic_0001>
module attributes {stable_mosaic.version = 11 : i64} {
  func.func @_at_pair_kernel(%arg0: i32, %arg1: i32, %arg2: memref<1x4x256xf32, #tpu.memory_space<vmem>>, %arg3: memref<1x4x256xf32, #tpu.memory_space<vmem>>, %arg4: memref<1x8x128xf32, #tpu.memory_space<vmem>>, %arg5: memref<1x256xf32, #tpu.memory_space<vmem>>, %arg6: memref<1x256xf32, #tpu.memory_space<vmem>>) attributes {dimension_semantics = [#tpu.dimension_semantics<parallel>, #tpu.dimension_semantics<arbitrary>], iteration_bounds = array<i64: 2, 1>, scalar_prefetch = 0 : i64, scratch_operands = 2 : i64, tpu.core_type = #tpu.core_type<tc>, window_params = [{transform_indices = @transform_0, window_bounds = array<i64: 1, 4, 256>}, {transform_indices = @transform_1, window_bounds = array<i64: 1, 4, 256>}, {transform_indices = @transform_2, window_bounds = array<i64: 1, 8, 128>}]} {
    %c0_i32 = arith.constant 0 : i32
    %0 = arith.cmpi eq, %arg1, %c0_i32 : i32
    %1 = arith.extui %0 : i1 to i32
    %c0_i32_0 = arith.constant 0 : i32
    %2 = arith.cmpi ne, %1, %c0_i32_0 : i32
    scf.if %2 {
      %cst_17 = arith.constant 0.000000e+00 : f32
      %18 = vector.broadcast %cst_17 : f32 to vector<1x256xf32>
      %c0_18 = arith.constant 0 : index
      %c0_19 = arith.constant 0 : index
      %19 = vector.load %arg5[%c0_18, %c0_19] : memref<1x256xf32, #tpu.memory_space<vmem>>, vector<1x256xf32>
      tpu.vector_store %arg5[%c0_18, %c0_19], %18 {strides = array<i32>} : memref<1x256xf32, #tpu.memory_space<vmem>>, vector<1x256xf32>,
      %cst_20 = arith.constant 0.000000e+00 : f32
      %20 = vector.broadcast %cst_20 : f32 to vector<1x256xf32>
      %c0_21 = arith.constant 0 : index
      %c0_22 = arith.constant 0 : index
      %21 = vector.load %arg6[%c0_21, %c0_22] : memref<1x256xf32, #tpu.memory_space<vmem>>, vector<1x256xf32>
      tpu.vector_store %arg6[%c0_21, %c0_22], %20 {strides = array<i32>} : memref<1x256xf32, #tpu.memory_space<vmem>>, vector<1x256xf32>,
    } else {
    }
    %c0 = arith.constant 0 : index
    %c0_1 = arith.constant 0 : index
    %c0_2 = arith.constant 0 : index
    %3 = vector.load %arg2[%c0, %c0_1, %c0_2] : memref<1x4x256xf32, #tpu.memory_space<vmem>>, vector<1x4x256xf32>
    %c0_3 = arith.constant 0 : index
    %c0_4 = arith.constant 0 : index
    %c0_5 = arith.constant 0 : index
    %4 = vector.load %arg3[%c0_3, %c0_4, %c0_5] : memref<1x4x256xf32, #tpu.memory_space<vmem>>, vector<1x4x256xf32>
    %c0_6 = arith.constant 0 : index
    %c0_7 = arith.constant 0 : index
    %5 = vector.load %arg5[%c0_6, %c0_7] : memref<1x256xf32, #tpu.memory_space<vmem>>, vector<1x256xf32>
    %6 = arith.mulf %3, %3 : vector<1x4x256xf32>
    %cst = arith.constant dense<0.000000e+00> : vector<1x256xf32>
    %7 = vector.multi_reduction <add>, %6, %cst [1] : vector<1x4x256xf32> to vector<1x256xf32>
    %8 = arith.addf %5, %7 : vector<1x256xf32>
    %c0_8 = arith.constant 0 : index
    %c0_9 = arith.constant 0 : index
    %9 = vector.load %arg5[%c0_8, %c0_9] : memref<1x256xf32, #tpu.memory_space<vmem>>, vector<1x256xf32>
    tpu.vector_store %arg5[%c0_8, %c0_9], %8 {strides = array<i32>} : memref<1x256xf32, #tpu.memory_space<vmem>>, vector<1x256xf32>,
    %c0_10 = arith.constant 0 : index
    %c0_11 = arith.constant 0 : index
    %10 = vector.load %arg6[%c0_10, %c0_11] : memref<1x256xf32, #tpu.memory_space<vmem>>, vector<1x256xf32>
    %11 = arith.mulf %4, %4 : vector<1x4x256xf32>
    %cst_12 = arith.constant dense<0.000000e+00> : vector<1x256xf32>
    %12 = vector.multi_reduction <add>, %11, %cst_12 [1] : vector<1x4x256xf32> to vector<1x256xf32>
    %13 = arith.addf %10, %12 : vector<1x256xf32>
    %c0_13 = arith.constant 0 : index
    %c0_14 = arith.constant 0 : index
    %14 = vector.load %arg6[%c0_13, %c0_14] : memref<1x256xf32, #tpu.memory_space<vmem>>, vector<1x256xf32>
    tpu.vector_store %arg6[%c0_13, %c0_14], %13 {strides = array<i32>} : memref<1x256xf32, #tpu.memory_space<vmem>>, vector<1x256xf32>,
    %c0_i32_15 = arith.constant 0 : i32
    %15 = arith.cmpi eq, %arg1, %c0_i32_15 : i32
    %16 = arith.extui %15 : i1 to i32
    %c0_i32_16 = arith.constant 0 : i32
    %17 = arith.cmpi ne, %16, %c0_i32_16 : i32
    scf.if %17 {
      %c0_17 = arith.constant 0 : index
      %c0_18 = arith.constant 0 : index
      %18 = vector.load %arg5[%c0_17, %c0_18] : memref<1x256xf32, #tpu.memory_space<vmem>>, vector<1x256xf32>
      %cst_19 = arith.constant 2.500000e-01 : f32
      %19 = vector.broadcast %cst_19 : f32 to vector<1x256xf32>
      %20 = arith.mulf %18, %19 : vector<1x256xf32>
      %c0_20 = arith.constant 0 : index
      %c0_21 = arith.constant 0 : index
      %21 = vector.load %arg6[%c0_20, %c0_21] : memref<1x256xf32, #tpu.memory_space<vmem>>, vector<1x256xf32>
      %cst_22 = arith.constant 2.500000e-01 : f32
      %22 = vector.broadcast %cst_22 : f32 to vector<1x256xf32>
      %23 = arith.mulf %21, %22 : vector<1x256xf32>
      %24 = arith.mulf %20, %20 : vector<1x256xf32>
      %cst_23 = arith.constant dense<0.000000e+00> : vector<1xf32>
      %25 = vector.multi_reduction <add>, %24, %cst_23 [1] : vector<1x256xf32> to vector<1xf32>
      %26 = vector.shape_cast %25 : vector<1xf32> to vector<1x1xf32>
      %27 = math.sqrt %26 : vector<1x1xf32>
      %28 = arith.mulf %23, %23 : vector<1x256xf32>
      %cst_24 = arith.constant dense<0.000000e+00> : vector<1xf32>
      %29 = vector.multi_reduction <add>, %28, %cst_24 [1] : vector<1x256xf32> to vector<1xf32>
      %30 = vector.shape_cast %29 : vector<1xf32> to vector<1x1xf32>
      %31 = math.sqrt %30 : vector<1x1xf32>
      %cst_25 = arith.constant 9.99999996E-13 : f32
      %32 = vector.broadcast %cst_25 : f32 to vector<1x1xf32>
      %33 = arith.maximumf %27, %32 : vector<1x1xf32>
      %34 = vector.broadcast %33 : vector<1x1xf32> to vector<1x256xf32>
      %35 = arith.divf %20, %34 : vector<1x256xf32>
      %cst_26 = arith.constant 9.99999996E-13 : f32
      %36 = vector.broadcast %cst_26 : f32 to vector<1x1xf32>
      %37 = arith.maximumf %31, %36 : vector<1x1xf32>
      %38 = vector.broadcast %37 : vector<1x1xf32> to vector<1x256xf32>
      %39 = arith.divf %23, %38 : vector<1x256xf32>
      %40 = arith.subf %35, %39 : vector<1x256xf32>
      %41 = arith.mulf %40, %40 : vector<1x256xf32>
      %42 = vector.shape_cast %41 : vector<1x256xf32> to vector<1x1x256xf32>
      %cst_27 = arith.constant dense<0.000000e+00> : vector<1xf32>
      %43 = vector.multi_reduction <add>, %42, %cst_27 [1, 2] : vector<1x1x256xf32> to vector<1xf32>
      %44 = vector.shape_cast %43 : vector<1xf32> to vector<1x1x1xf32>
      %45 = vector.extract %44[0, 0, 0] : f32 from vector<1x1x1xf32>
      %46 = vector.broadcast %45 : f32 to vector<1x8x128xf32>
      %c0_28 = arith.constant 0 : index
      %c0_29 = arith.constant 0 : index
      %c0_30 = arith.constant 0 : index
      %47 = vector.load %arg4[%c0_28, %c0_29, %c0_30] : memref<1x8x128xf32, #tpu.memory_space<vmem>>, vector<1x8x128xf32>
      tpu.vector_store %arg4[%c0_28, %c0_29, %c0_30], %46 {strides = array<i32>} : memref<1x8x128xf32, #tpu.memory_space<vmem>>, vector<1x8x128xf32>,
    } else {
    }
    return
  }
  func.func @transform_0(%arg0: i32, %arg1: i32) -> (i32, i32, i32) {
    %c0_i32 = arith.constant 0 : i32
    %c0_i32_0 = arith.constant 0 : i32
    return %arg0, %arg1, %c0_i32 : i32, i32, i32
  }
  func.func @transform_1(%arg0: i32, %arg1: i32) -> (i32, i32, i32) {
    %c0_i32 = arith.constant 0 : i32
    %c0_i32_0 = arith.constant 0 : i32
    return %arg0, %arg1, %c0_i32 : i32, i32, i32
  }
  func.func @transform_2(%arg0: i32, %arg1: i32) -> (i32, i32, i32) {
    %c0_i32 = arith.constant 0 : i32
    %c0_i32_0 = arith.constant 0 : i32
    %c0_i32_1 = arith.constant 0 : i32
    return %arg0, %c0_i32, %c0_i32_0 : i32, i32, i32
  }
}

</mosaic_0001>

<bundles_post_ra>
// kernel: tpu_custom_call.1
= control target key start
LH: loop header
LB: loop body
LE: loop exit
PB: predicated region body
PF: predicated region fallthrough
CT: control target
= control target key end

     0   :  { %7 = vsyncpa [#allocation5], 0  ;;  %s962_s0 = inlined_call_operand.hbm [shape: f32[2,4,256], index: 0, kind: input, shape index: {}]   ;;  %s963_s1 = inlined_call_operand.hbm [shape: f32[2,4,256], index: 1, kind: input, shape index: {}]   ;;  %s964_s2 = inlined_call_operand.hbm [shape: f32[2,8,128], index: 2, kind: output, shape index: {}]  }
   0x1   :  { %9 = vsyncpa [#allocation5 + $0x1], 0 }
   0x2   :  { %10 = vsyncpa [#allocation8], 0 }
   0x3   :  { %12 = vsyncpa [#allocation8 + $0x1], 0 }
   0x4   :  { %13 = vsyncpa [#allocation6], 0 }
   0x5   :  { %15 = vsyncpa [#allocation6 + $0x1], 0  ;;  %s795_s9 = smov 0   ;;  %s797_s10 = smov 0  }
   0x6   :  { %s799_s11 = smov 0   ;;  %s801_s12 = smov 0  }
   0x7   :  { %s803_s13 = smov 0   ;;  %s805_s14 = smov 0  }
   0x8 LB: > { %s533_s15 = sadd.s32 4294967295, %s777_s14   ;;  %s534_s16 = sadd.s32 4294967294, %s777_s14   ;;  %s777_s14 = sphi %s805_s14, %s21_s14   ;;  %s773_s13 = sphi %s803_s13, %s975_s13   ;;  %s769_s12 = sphi %s801_s12, %s974_s12   ;;  %s765_s11 = sphi %s799_s11, %s973_s11   ;;  %s761_s10 = sphi %s797_s10, %s972_s10   ;;  %s757_s9 = sphi %s795_s9, %s971_s9  }
   0x9   : > { %s33_s17 = sadd.s32 1, %s773_s13  ;;  %s42_s18 = sadd.s32 1, %s765_s11 }
   0xa   : > { %p35_p0 = scmp.ge.s32.totalorder %s33_s17, 2  ;;  %p49_p1 = scmp.ne.s32.totalorder %s765_s11, %s761_s10 }
   0xb   : > { %p50_p2 = scmp.eq.s32.totalorder %s777_s14, 0  ;;  %p55_p3 = scmp.ne.s32.totalorder %s761_s10, %s757_s9 }
   0xc   : > { %s977_s17 = smov (%p35_p0, %s33_s17), 0  ;;  %p56_p5 = scmp.eq.s32.totalorder %s533_s15, 0 }
   0xd   : > { %p836_p4 = por %p50_p2, %p49_p1  ;;  %s37_s20 = ssub.s32 %s773_s13, %s977_s17 }
   0xe   : > { %p107_p6 = scmp.eq.s32.totalorder %s533_s15, 1  ;;  %p40_p7 = scmp.eq.s32.totalorder %s37_s20, 0 }
   0xf   : > { %p842_p8 = por %p56_p5, %p55_p3  ;;  %p113_p10 = scmp.eq.s32.totalorder %s534_s16, 1 }
  0x10   : > { %p846_p9 = por %p107_p6, %p49_p1  ;;  %p536_p12 = scmp.ge.s32.totalorder %s777_s14, 2 }
  0x11   : > { %s851_s23 = scalar_select %p40_p7, %s765_s11, %s42_s18  }
  0x12   : > { %p853_p11 = por %p113_p10, %p55_p3  ;;  %p572_p13 = scmp.lt.s32.totalorder %s777_s14, 2 }
  0x13   : > { %s133_s25 = sand.u32 1, %s765_s11   ;;  %s551_s27 = sshll.u32 %s773_s13, 3 }
  0x14   : > { %s537_s26 = sshll.u32 %s133_s25, 3  ;;  %s144_s30 = scalar_lea.hbm %s962_s0, %s551_s27 }
  0x15   : > { %s137_s3 = scalar_lea.vmem [#allocation4], %s537_s26  ;;  %s146_s5 = sshll.u32 %s144_s30, 4  ;;  %s147_s5 = int_to_ptr.hbm [resolvable:$true] %s146_s5 }
  0x16   : > { %s148_s4 = sshll.u32 %s137_s3, 4  ;;  %p562_p0 = pnand %p572_p13, %p836_p4  ;;  %s149_s4 = int_to_ptr.vmem [resolvable:$true] %s148_s4 }
  0x17   : > { %p543_p1 = scmp.ge.s32.totalorder %s777_s14, 1  ;;  %p175_p2 = scmp.lt.s32.totalorder %s777_s14, 3 }
  0x18   : > { %s134_s6 = scalar_lea.sflag [#allocation5], %s133_s25  ;;  %s166_s15 = scalar_lea.hbm %s963_s1, %s551_s27 }
  0x19   : > { %564 = dma.hbm_to_vmem [thread:$0]  (!%p562_p0), %s147_s5, 128, %s149_s4, %s134_s6  }
  0x1a   : > { %p176_p3 = pnand %p543_p1, %p175_p2  ;;  %s159_s16 = scalar_lea.vmem [#allocation7], %s537_s26 }
  0x1b   : > { %s170_s18 = sshll.u32 %s159_s16, 4  ;;  %s168_s20 = sshll.u32 %s166_s15, 4  ;;  %s171_s18 = int_to_ptr.vmem [resolvable:$true] %s170_s18  ;;  %s169_s20 = int_to_ptr.hbm [resolvable:$true] %s168_s20 }
  0x1c   : > { %s156_s28 = scalar_lea.sflag [#allocation8], %s133_s25  ;;  %179 = sbr.rel (%p176_p3) target bundleno = 443 (0x1bb), region = 28 }
  0x1d   : > { %567 = dma.hbm_to_vmem [thread:$0]  (!%p562_p0), %s169_s20, 128, %s171_s18, %s156_s28  }
  0x1e   : > { %s872_s19 = sand.u32 (!%p176_p3), 1, %s761_s10  }
  0x1f   : > { %s875_s29 = sshll.u32 (!%p176_p3), %s872_s19, 3  ;;  %s182_s30 = scalar_lea.sflag (!%p176_p3), [#allocation5], %s872_s19 }
  0x20   : > { %s185_s3 = scalar_lea.vmem (!%p176_p3), [#allocation4], %s875_s29 }
  0x21   : > { %744 = dma.done.wait (%p842_p8), %s182_s30, 128  }
  0x22   : > { %746 = vsyncadd (%p842_p8), %s182_s30, 4294967168  ;;  %s192_s25 = scalar_lea.sflag [#allocation8], %s872_s19  ;;  %s195_s26 = scalar_lea.vmem [#allocation7], %s875_s29 }
  0x23   : > { %748 = dma.done.wait (%p842_p8), %s192_s25, 128  }
  0x24   : > { %750 = vsyncadd (%p842_p8), %s192_s25, 4294967168  ;;  %v226_v0 = vlaneseq  ;;  %v779_v2 = vmov 0.0   ;;  %v232_v3 = vld [vmem:[%s185_s3] sm:$0xff]  ;;  %v233_v5 = vld [vmem:[%s195_s26] sm:$0xff]  ;;  %vm242_vm1 = vcmask 1043456   ;;  %vm260_vm2 = vcmask 1040384  }
  0x25   : > { %v235_v4 = vmul.f32 %v232_v3, %v232_v3  ;;  %v270_v6 = vmul.f32 %v233_v5, %v233_v5  ;;  %s548_s21 = sshll.u32 %s769_s12, 3  ;;  %s221_s6 = scalar_lea.vmem [#allocation9], %s875_s29 }
  0x26   : > { %vm889_vm0 = vcmp.lt.s32.totalorder %v226_v0, 256  ;;  %s421_s5 = scalar_lea.hbm %s964_s2, %s548_s21  ;;  %s423_s7 = sshll.u32 %s221_s6, 4  ;;  %s424_s7 = int_to_ptr.vmem [resolvable:$true] %s423_s7 }
  0x27   : > { %230 = vst.msk [vmem:[#allocation2] sm:$0x3] %vm889_vm0, %v779_v2  ;;  %s425_s8 = sshll.u32 %s421_s5, 4  ;;  %s411_s16 = scalar_lea.sflag [#allocation6], %s872_s19  ;;  %s426_s8 = int_to_ptr.hbm [resolvable:$true] %s425_s8 }
  0x28   : > { %231 = vst.msk [vmem:[#allocation3] sm:$0x3] %vm889_vm0, %v779_v2  ;;  %s705_s18 = sshra.s32 %s426_s8, 4  ;;  %s711_s30 = scalar_lea.hbm %s964_s2, 16  ;;  %s706_s18 = int_to_ptr.hbm [resolvable:$true] %s705_s18 }
  0x29   : > { %237 = vst [vmem:[#allocation1] ss:$2 sm:$0xff] %v235_v4  ;;  %s707_s20 = scalar_lea.hbm %s706_s18, 8  ;;  %p712_p7 = scmp.lt.s32.totalorder %s706_s18, %s964_s2 }
  0x2a   : > { %p708_p4 = scmp.ne.s32.totalorder %s706_s18, %s707_s20  ;;  %p713_p8 = scmp.lt.s32.totalorder %s711_s30, %s707_s20 }
  0x2c   : > { %p709_p5 = pnand %p708_p4, %p846_p9  ;;  %p714_p10 = por %p713_p8, %p712_p7 }
  0x2e   : > { %v234_v31 = vld [vmem:[#allocation2] sm:$0x3]  ;;  %p710_p6 = pneg %p709_p5 }
  0x2f   : > { %v269_v43 = vld [vmem:[#allocation3] sm:$0x3] }
  0x30   : > { %v238_v7 = vld.sshfl [vmem:[#allocation1] sm:$0xff pattern:$0x75316420]  ;;  %v239_v8 = vld.sshfl [vmem:[#allocation1 + $0x8] sm:$0xff pattern:$0x75316420]  ;;  %p715_p13 = pnand %p714_p10, %p710_p6 }
  0x31   : > { %v243_v9 = vsel %vm242_vm1, %v238_v7, 0.0  ;;  %v250_v10 = vsel %vm242_vm1, %v239_v8, 0.0  ;;  %272 = vst [vmem:[#allocation1] ss:$2 sm:$0xff] %v270_v6 }
  0x32   : > { %v244_v11 = vrot.slane %v243_v9, 4  ;;  %v251_v12 = vrot.slane %v250_v10, 4 }
  0x34   : > { %v245_v13 = vadd.f32 %v244_v11, %v243_v9  ;;  %v252_v14 = vadd.f32 %v251_v12, %v250_v10 }
  0x36   : > { %v246_v15 = vrot.slane %v245_v13, 2  ;;  %v253_v16 = vrot.slane %v252_v14, 2 }
  0x38   : > { %v247_v17 = vadd.f32 %v246_v15, %v245_v13  ;;  %v254_v18 = vadd.f32 %v253_v16, %v252_v14  ;;  %v273_v19 = vld.sshfl [vmem:[#allocation1] sm:$0xff pattern:$0x75316420]  ;;  %v274_v20 = vld.sshfl [vmem:[#allocation1 + $0x8] sm:$0xff pattern:$0x75316420] }
  0x39   : > { %v277_v21 = vsel %vm242_vm1, %v273_v19, 0.0  ;;  %v284_v22 = vsel %vm242_vm1, %v274_v20, 0.0 }
  0x3a   : > { %v248_v23 = vrot.slane %v247_v17, 1  ;;  %v255_v24 = vrot.slane %v254_v18, 1  ;;  %v278_v25 = vrot.slane %v277_v21, 4  ;;  %v285_v26 = vrot.slane %v284_v22, 4 }
  0x3c   : > { %v249_v27 = vadd.f32 %v248_v23, %v247_v17  ;;  %v256_v28 = vadd.f32 %v255_v24, %v254_v18  ;;  %v279_v29 = vadd.f32 %v278_v25, %v277_v21  ;;  %v286_v30 = vadd.f32 %v285_v26, %v284_v22 }
  0x3e   : > { %v259_v32 = vrot.slane %v256_v28, 7  ;;  %v280_v33 = vrot.slane %v279_v29, 2  ;;  %v287_v34 = vrot.slane %v286_v30, 2 }
  0x40   : > { %v261_v35 = vsel %vm260_vm2, %v249_v27, %v259_v32  ;;  %v281_v36 = vadd.f32 %v280_v33, %v279_v29  ;;  %v288_v37 = vadd.f32 %v287_v34, %v286_v30 }
  0x41   : > { %v263_v38 = vadd.f32 %v261_v35, %v234_v31 }
  0x42   : > { %v282_v39 = vrot.slane %v281_v36, 1  ;;  %v289_v40 = vrot.slane %v288_v37, 1 }
  0x43   : > { %268 = vst.msk [vmem:[#allocation2] sm:$0x3] %vm889_vm0, %v263_v38 }
  0x44   : > { %v283_v41 = vadd.f32 %v282_v39, %v281_v36  ;;  %v290_v42 = vadd.f32 %v289_v40, %v288_v37 }
  0x46   : > { %v293_v44 = vrot.slane %v290_v42, 7 }
  0x48   : > { %v294_v45 = vsel %vm260_vm2, %v283_v41, %v293_v44 }
  0x49   : > { %v296_v46 = vadd.f32 %v294_v45, %v269_v43 }
  0x4a   : > { %v301_v47 = vld [vmem:[#allocation2] sm:$0x3] }
  0x4b   : > { %v905_v48 = vmul.f32 0.25, %v301_v47  ;;  %297 = vst.msk [vmem:[#allocation3] sm:$0x3] %vm889_vm0, %v296_v46 }
  0x4d   : > { %v305_v49 = vmul.f32 %v905_v48, %v905_v48 }
  0x4f   : > { %v307_v50 = vperm.slane %v305_v49, 0  ;;  %v308_v51 = vperm.slane %v305_v49, 1 }
  0x51   : > { %v311_v52 = vsel %vm260_vm2, %v307_v50, 0.0  ;;  %v312_v53 = vsel %vm260_vm2, %v308_v51, 0.0 }
  0x52   : > { %v313_v54 = vadd.f32 %v312_v53, %v311_v52  ;;  %v303_v55 = vld [vmem:[#allocation3] sm:$0x3] }
  0x53   : > { %v913_v56 = vmul.f32 0.25, %v303_v55 }
  0x54   : > { %314 = vadd.xlane.f32.xlu0 %v313_v54 }
  0x55   : > { %v328_v57 = vmul.f32 %v913_v56, %v913_v56 }
  0x57   : > { %v330_v58 = vperm.slane %v328_v57, 0  ;;  %v331_v59 = vperm.slane %v328_v57, 1 }
  0x59   : > { %v334_v60 = vsel %vm260_vm2, %v330_v58, 0.0  ;;  %v335_v61 = vsel %vm260_vm2, %v331_v59, 0.0 }
  0x5a   : > { %v336_v62 = vadd.f32 %v335_v61, %v334_v60 }
  0x5c   : > { %337 = vadd.xlane.f32.xlu0 %v336_v62 }
  0xc7   : > { %v315_v63 = vpop.xlane.xlu0 %314 }
  0xc8   : > { %623 = vrsqrt.f32 %v315_v63  ;;  %vm323_vm3 = vcmp.eq.f32.partialorder %v315_v63, inf  ;;  %v326_v11 = vand.u32 2147483648, %v315_v63  ;;  %vm325_vm4 = vcmp.eq.f32.partialorder %v315_v63, 0.0 }
  0xce   : > { %v624_v0 = vpop.eup %623 }
  0xcf   : > { %v317_v1 = vmul.f32 %v624_v0, %v315_v63  ;;  %v338_v2 = vpop.xlane.xlu0 %337 }
  0xd0   : > { %625 = vrsqrt.f32 %v338_v2  ;;  %vm346_vm5 = vcmp.eq.f32.partialorder %v338_v2, inf  ;;  %v349_v20 = vand.u32 2147483648, %v338_v2  ;;  %vm348_vm6 = vcmp.eq.f32.partialorder %v338_v2, 0.0 }
  0xd1   : > { %v318_v3 = vmul.f32 %v624_v0, %v317_v1 }
  0xd3   : > { %v319_v4 = vmul.f32 0.5, %v318_v3 }
  0xd5   : > { %v320_v5 = vsub.f32 1.5, %v319_v4 }
  0xd6   : > { %v626_v6 = vpop.eup %625 }
  0xd7   : > { %v321_v7 = vmul.f32 %v624_v0, %v320_v5  ;;  %v340_v8 = vmul.f32 %v626_v6, %v338_v2 }
  0xd9   : > { %v322_v9 = vmul.f32 %v321_v7, %v315_v63  ;;  %v341_v10 = vmul.f32 %v626_v6, %v340_v8 }
  0xdb   : > { %v324_v12 = vsel %vm323_vm3, %v315_v63, %v322_v9  ;;  %v342_v13 = vmul.f32 0.5, %v341_v10 }
  0xdc   : > { %v327_v14 = vsel %vm325_vm4, %v326_v11, %v324_v12 }
  0xdd   : > { %v351_v15 = vmax.f32 %v327_v14, 1e-12  ;;  %v343_v16 = vsub.f32 1.5, %v342_v13 }
  0xdf   : > { %v353_v17 = vperm.slane %v351_v15, 0  ;;  %v344_v18 = vmul.f32 %v626_v6, %v343_v16 }
  0xe1   : > { %627 = vrcp.f32 %v353_v17  ;;  %v345_v19 = vmul.f32 %v344_v18, %v338_v2  ;;  %v366_v32 = vand.u32 2147483648, %v353_v17  ;;  %vm360_vm8 = vweird.f32 %v353_v17 }
  0xe2   : > { %v364_v33 = vand.u32 2147483647, %v353_v17 }
  0xe3   : > { %v347_v21 = vsel %vm346_vm5, %v338_v2, %v345_v19  ;;  %v367_v39 = vor.u32 1.1754944e-38, %v366_v32 }
  0xe4   : > { %v350_v22 = vsel %vm348_vm6, %v349_v20, %v347_v21  ;;  %vm365_vm11 = vcmp.eq.f32.partialorder %v364_v33, 8.507059e+37 }
  0xe5   : > { %v370_v23 = vmax.f32 %v350_v22, 1e-12 }
  0xe7   : > { %v628_v24 = vpop.eup %627  ;;  %v372_v25 = vperm.slane %v370_v23, 0 }
  0xe8   : > { %v356_v26 = vmul.f32 %v628_v24, %v353_v17  ;;  %vm361_vm7 = vweird.f32 %v628_v24 }
  0xe9   : > { %629 = vrcp.f32 %v372_v25  ;;  %vm362_vm9 = vmor %vm360_vm8, %vm361_vm7  ;;  %v385_v35 = vand.u32 2147483648, %v372_v25  ;;  %v383_v38 = vand.u32 2147483647, %v372_v25  ;;  %vm379_vm12 = vweird.f32 %v372_v25 }
  0xea   : > { %v357_v27 = vsub.f32 1.0, %v356_v26 }
  0xeb   : > { %v386_v42 = vor.u32 1.1754944e-38, %v385_v35  ;;  %vm384_vm14 = vcmp.eq.f32.partialorder %v383_v38, 8.507059e+37 }
  0xec   : > { %v358_v28 = vmul.f32 %v628_v24, %v357_v27 }
  0xee   : > { %v359_v30 = vadd.f32 %v628_v24, %v358_v28 }
  0xef   : > { %v630_v29 = vpop.eup %629 }
  0xf0   : > { %v375_v31 = vmul.f32 %v630_v29, %v372_v25  ;;  %v363_v36 = vsel %vm362_vm9, %v628_v24, %v359_v30  ;;  %vm380_vm10 = vweird.f32 %v630_v29 }
  0xf1   : > { %v368_v41 = vsel %vm365_vm11, %v367_v39, %v363_v36  ;;  %vm381_vm13 = vmor %vm379_vm12, %vm380_vm10 }
  0xf2   : > { %v376_v34 = vsub.f32 1.0, %v375_v31  ;;  %v369_v45 = vmul.f32 %v368_v41, %v905_v48 }
  0xf4   : > { %v377_v37 = vmul.f32 %v630_v29, %v376_v34 }
  0xf6   : > { %v378_v40 = vadd.f32 %v630_v29, %v377_v37 }
  0xf8   : > { %v382_v43 = vsel %vm381_vm13, %v630_v29, %v378_v40 }
  0xf9   : > { %v387_v44 = vsel %vm384_vm14, %v386_v42, %v382_v43 }
  0xfa   : > { %v388_v46 = vmul.f32 %v387_v44, %v913_v56 }
  0xfc   : > { %v389_v47 = vsub.f32 %v369_v45, %v388_v46 }
  0xfe   : > { %v390_v49 = vmul.f32 %v389_v47, %v389_v47 }
 0x100   : > { %v392_v50 = vperm.slane %v390_v49, 0  ;;  %v393_v51 = vperm.slane %v390_v49, 1 }
 0x102   : > { %v396_v52 = vsel %vm260_vm2, %v392_v50, 0.0  ;;  %v397_v53 = vsel %vm260_vm2, %v393_v51, 0.0 }
 0x103   : > { %v398_v54 = vadd.f32 %v397_v53, %v396_v52 }
 0x105   : > { %399 = vadd.xlane.f32.xlu1 %v398_v54 }
 0x178   : > { %v400_v55 = vpop.xlane.xlu1 %399 }
 0x179   : > { %v401_v57 = vrot.slane %v400_v55, 4 }
 0x17b   : > { %v402_v58 = vadd.f32 %v401_v57, %v400_v55 }
 0x17d   : > { %v403_v59 = vrot.slane %v402_v58, 2 }
 0x17f   : > { %v404_v48 = vadd.f32 %v403_v59, %v402_v58 }
 0x181   : > { %v405_v60 = vrot.slane %v404_v48, 1 }
 0x183   : > { %v406_v56 = vadd.f32 %v405_v60, %v404_v48 }
 0x185   : > { %553 = vpush %v406_v56 }
 0x1b6   : > { %s554_s15 = spop %553 }
 0x1b7   : > { %v408_v61 = vstv %s554_s15 }
 0x1b8   : > { %409 = vst [vmem:[%s221_s6] sm:$0xff] %v408_v61 }
 0x1b9   : > { %718 = shalt.err (!%p715_p13)
}
 0x1ba   : > { %559 = dma.vmem_to_hbm [thread:$0]  (%p846_p9), %s424_s7, 128, %s426_s8, %s411_s16  }
 0x1bb PF: > { %s437_s19 = sand.u32 1, %s757_s9   ;;  %p569_p0 = pnand %p536_p12, %p853_p11 }
 0x1bc   : > { %s438_s25 = scalar_lea.sflag [#allocation6], %s437_s19 }
 0x1bd   : > { %p570_p1 = pneg %p569_p0 }
 0x1bf   : > { %752 = dma.done.wait (%p570_p1), %s438_s25, 128  }
 0x1c0   : > { %754 = vsyncadd (%p570_p1), %s438_s25, 4294967168  ;;  %s21_s14 = sadd.s32 1, %s777_s14   ;;  %s971_s9 = smov %s761_s10 }
 0x1c1   : > { %p18_p2 = scmp.ge.s32.totalorder %s21_s14, 4   ;;  %s972_s10 = smov %s765_s11 }
 0x1c2   : > { %s973_s11 = smov %s851_s23  ;;  %s974_s12 = smov %s773_s13 }
 0x1c3   : > { %s975_s13 = smov %s977_s17  ;;  %20 = sbr.rel (!%p18_p2) target bundleno = 8 (0x8), region = 94 }
 0x1c8   :  { %444 = vsyncpa [#allocation5], 1 }
 0x1c9   :  { %446 = vsyncpa [#allocation5 + $0x1], 1 }
 0x1ca   :  { %447 = vsyncpa [#allocation8], 1 }
 0x1cb   :  { %449 = vsyncpa [#allocation8 + $0x1], 1 }
 0x1cc   :  { %450 = vsyncpa [#allocation6], 1 }
 0x1cd   :  { %452 = vsyncpa [#allocation6 + $0x1], 1 }

</bundles_post_ra>
